<compile_context>
chip_gen: v7x
topology: tpu7x:2x2x1
jax: 0.10.0
libtpu: 0.0.40
codegen_flags: <defaults>
</compile_context>

<pallas_src>
import functools

import jax
import jax.numpy as jnp
import numpy as np
from jax.experimental import pallas as pl
from jax.experimental.pallas import tpu as pltpu

_LANE = 128
_SUBLANE = 8


def _round_up(x, m):
    return ((x + m - 1) // m) * m


def _vmem_capacity_bytes():
    """Physical VMEM per core (generation-aware), conservative fallback."""
    try:
        info = pltpu.get_tpu_info()
        cap = getattr(info, "vmem_capacity_bytes", None)
        if cap:
            return int(cap)
    except Exception:
        pass
    return 64 * 1024 * 1024  # v7x per-TC physical VMEM (smallest current gen)


def _pinned_spec(block_shape, index_map):
    """Single-buffered BlockSpec for operands constant along the inner axis.

    W/bias only change with the outer D chunk, so a second pipeline buffer is
    pure VMEM waste. Falls back to the default (double-buffered) spec on JAX
    versions without `pipeline_mode`.
    """
    try:
        return pl.BlockSpec(block_shape, index_map, pipeline_mode=pl.Buffered(1))
    except Exception:
        return pl.BlockSpec(block_shape, index_map)


def _mmd_rff_kernel(z_ref, w_ref, b_ref, ws_ref, o_ref, acc_ref, *,
                    n_sub, sub, cos_dtype):
    """One (D-chunk, batch-tile) grid step.

    z_ref  : (tile, F)  rows of [X; Y]                    (matmul_dtype)
    w_ref  : (F, Dt)    RFF weight chunk                  (matmul_dtype)
    b_ref  : (1, Dt)    RFF bias chunk                    (f32)
    ws_ref : (tile, 1)  signed normalized sample weights  (f32)
    o_ref  : (1, Dt)    d = mu_X - mu_Y for this D chunk  (f32)
    acc_ref: (8, Dt)    f32 sublane-blocked partial-sum accumulator
    """
    b_idx = pl.program_id(1)

    @pl.when(b_idx == 0)
    def _():
        acc_ref[...] = jnp.zeros_like(acc_ref)

    w = w_ref[...]
    bias = b_ref[...]

    # Two independent sub-chunks: chunk k+1's Z@W (MXU) can issue while chunk
    # k's cos (EUP/VALU) and weighted reduction (VPU) execute.
    upd = None
    for k in range(n_sub):
        z = z_ref[pl.ds(k * sub, sub), :]
        h = jnp.dot(z, w, preferred_element_type=jnp.float32)
        ph = h + bias
        if jnp.dtype(cos_dtype) != jnp.dtype(jnp.float32):
            f = jnp.cos(ph.astype(cos_dtype)).astype(jnp.float32)
        else:
            f = jnp.cos(ph)
        # VPU weighted reduction (replaces the M=1 reduction matmul): scale
        # rows by the signed weights and fold the sub-chunk down to 8 sublanes
        # with plain vreg adds; the 8->1 XLU reduce happens once, in finalize.
        wf = f * ws_ref[pl.ds(k * sub, sub), :]
        part = wf.reshape(sub // _SUBLANE, _SUBLANE, wf.shape[-1]).sum(axis=0)
        upd = part if upd is None else upd + part
    acc_ref[...] += upd

    @pl.when(b_idx == pl.num_programs(1) - 1)
    def _():
        o_ref[...] = jnp.sum(acc_ref[...], axis=0, keepdims=True)


def mmd_rff(X, Y, W, bias, weights_X=None, weights_Y=None, *,
            row_tile=512, d_tile=512,
            matmul_dtype=jnp.float32, cos_dtype=jnp.float32):
    """Pallas implementation of MMD_RFF.forward.

    For production shapes prefer matmul_dtype=jnp.bfloat16 (halves Z/W HBM
    traffic + VMEM, ~2x MXU throughput on every generation); bias, signed
    weights, cos and the accumulator stay f32.  cos_dtype=jnp.bfloat16 is an
    additional option on v6e/v7x only (v5e has no bf16 VPU/EUP).
    """
    B1, F = X.shape
    B2, _ = Y.shape
    D = W.shape[1]
    scale = float(np.sqrt(2.0 / D))

    def _norm_weights(w, batch):
        if w is None:
            return jnp.full((batch,), 1.0 / batch, dtype=jnp.float32)
        w = jnp.asarray(w, dtype=jnp.float32).reshape(batch)  # cast BEFORE sum
        return w / jnp.sum(w)

    wX = _norm_weights(weights_X, B1)
    wY = _norm_weights(weights_Y, B2)

    total = B1 + B2
    z_isz = jnp.dtype(matmul_dtype).itemsize

    # ---- generation-aware tiling / VMEM budget ------------------------------
    cap = _vmem_capacity_bytes()
    vmem_limit = int(min(max(cap * 0.8, 32 * 2 ** 20), 100 * 2 ** 20))
    tile_budget = int(vmem_limit * 0.6)     # headroom for intermediates/compiler

    d128 = _round_up(D, _LANE)
    # D tile: keep it a multiple of 256 (default 512) so the 2x256 MXU on
    # v6e/v7x stays at full N width; explicit smaller requests are honored.
    dt = min(_round_up(max(int(d_tile), _LANE), _LANE), d128)
    tile = min(_round_up(max(int(row_tile), _SUBLANE), _SUBLANE),
               _round_up(total, _SUBLANE))

    def _est(t, d):
        z = 2 * t * F * z_isz                    # double-buffered Z tile
        w = 1 * F * d * z_isz                    # W chunk (single-buffered)
        ws = 2 * t * _LANE * 4                   # (t, 1) pads to 128 lanes
        bo = 4 * _SUBLANE * d * 4                # bias + output blocks (padded)
        acc = _SUBLANE * d * 4
        ns = 2 if t % (2 * _SUBLANE) == 0 else 1
        interm = 3 * (t // ns) * d * 4           # h, f, wf live per sub-chunk
        return z + w + ws + bo + acc + interm

    while _est(tile, dt) > tile_budget:
        if dt > 256:
            dt = _round_up(dt // 2, _LANE)
        elif tile > 64:
            tile = max(64, _round_up(tile // 2, _SUBLANE))
        elif dt > _LANE:
            dt = _round_up(dt // 2, _LANE)
        else:
            break

    d_padded = _round_up(d128, dt)
    padded_total = _round_up(total, tile)
    n_sub = 2 if tile % (2 * _SUBLANE) == 0 else 1
    sub = tile // n_sub

    # ---- operand prep --------------------------------------------------------
    Z = jnp.concatenate(
        [jnp.asarray(X), jnp.asarray(Y)], axis=0).astype(matmul_dtype)
    ws = jnp.concatenate([wX, -wY]).reshape(total, 1)          # signed weights
    Wp = jnp.asarray(W).astype(matmul_dtype)
    bp = jnp.asarray(bias).reshape(1, D).astype(jnp.float32)
    if padded_total != total:                  # zero rows carry zero weight
        Z = jnp.pad(Z, ((0, padded_total - total), (0, 0)))
        ws = jnp.pad(ws, ((0, padded_total - total), (0, 0)))
    if d_padded != D:                          # padded D columns sliced off below
        Wp = jnp.pad(Wp, ((0, 0), (0, d_padded - D)))
        bp = jnp.pad(bp, ((0, 0), (0, d_padded - D)))

    kernel = functools.partial(_mmd_rff_kernel, n_sub=n_sub, sub=sub,
                               cos_dtype=jnp.dtype(cos_dtype))

    d_signed = pl.pallas_call(
        kernel,
        out_shape=jax.ShapeDtypeStruct((1, d_padded), jnp.float32),
        grid_spec=pltpu.PrefetchScalarGridSpec(
            num_scalar_prefetch=0,
            grid=(d_padded // dt, padded_total // tile),
            in_specs=[
                pl.BlockSpec((tile, F), lambda d, b: (b, 0)),       # Z rows
                _pinned_spec((F, dt), lambda d, b: (0, d)),         # W chunk
                _pinned_spec((1, dt), lambda d, b: (0, d)),         # bias chunk
                pl.BlockSpec((tile, 1), lambda d, b: (b, 0)),       # signed weights
            ],
            out_specs=pl.BlockSpec((1, dt), lambda d, b: (0, d)),   # d chunk
            scratch_shapes=[pltpu.VMEM((_SUBLANE, dt), jnp.float32)],
        ),
        compiler_params=pltpu.CompilerParams(
            # D axis is embarrassingly parallel (shards across v7x's 2 TCs,
            # disjoint output blocks); batch axis is the reduction.
            dimension_semantics=("parallel", "arbitrary"),
            vmem_limit_bytes=vmem_limit,
        ),
    )(Z, Wp, bp, ws)

    d_xy = d_signed[0, :D]                      # drop lane padding
    # ||scale * d|| == scale * ||d||; trivial D-length norm stays in the wrapper.
    return scale * jnp.sqrt(jnp.sum(d_xy * d_xy))


def _reference(X, Y, W, bias, wX=None, wY=None):
    D = W.shape[1]
    scale = np.sqrt(2.0 / D)
    fX = jnp.cos(X @ W + bias) * scale
    fY = jnp.cos(Y @ W + bias) * scale
    mu_X = fX.mean(0) if wX is None else ((wX[:, None] / wX.sum()) * fX).sum(0)
    mu_Y = fY.mean(0) if wY is None else ((wY[:, None] / wY.sum()) * fY).sum(0)
    d = mu_X - mu_Y
    return jnp.sqrt(jnp.sum(d * d))


if __name__ == "__main__":
    # Small shapes consistent with the module: X (B1, F), Y (B2, F).
    B1, B2, F, D = 8, 8, 16, 128
    sigma = 1.0

    key = jax.random.PRNGKey(0)
    kx, ky, kw, kb, kwx, kwy = jax.random.split(key, 6)

    X = jax.random.normal(kx, (B1, F), dtype=jnp.float32)
    Y = jax.random.normal(ky, (B2, F), dtype=jnp.float32) + 0.5

    # Deterministic parameter init mirroring RFFEmbedding.__init__:
    #   weight ~ N(0,1) * sqrt(2)/sigma ; bias ~ Uniform(-pi, pi)
    W = jax.random.normal(kw, (F, D), dtype=jnp.float32) * (np.sqrt(2.0) / sigma)
    bias = jax.random.uniform(kb, (D,), dtype=jnp.float32,
                              minval=-np.pi, maxval=np.pi)

    # Unweighted branch (matches .mean(0)).
    mmd = mmd_rff(X, Y, W, bias)
    jax.block_until_ready(mmd)
    ref = _reference(X, Y, W, bias)
    assert jnp.allclose(mmd, ref, atol=1e-3, rtol=1e-3), (mmd, ref)

    # Weighted branch.
    wX = jax.random.uniform(kwx, (B1,), dtype=jnp.float32, minval=0.1, maxval=1.0)
    wY = jax.random.uniform(kwy, (B2,), dtype=jnp.float32, minval=0.1, maxval=1.0)
    mmd_w = mmd_rff(X, Y, W, bias, wX, wY)
    jax.block_until_ready(mmd_w)
    ref_w = _reference(X, Y, W, bias, wX, wY)
    assert jnp.allclose(mmd_w, ref_w, atol=1e-3, rtol=1e-3), (mmd_w, ref_w)

    # bf16 MXU operands (production default option); post-matmul math is f32.
    mmd_bf16 = mmd_rff(X, Y, W, bias, matmul_dtype=jnp.bfloat16)
    jax.block_until_ready(mmd_bf16)
    assert jnp.allclose(mmd_bf16, ref, atol=0.1, rtol=0.1), (mmd_bf16, ref)

    # Multi-step grid: batch split into row tiles (reduction axis) — exercises
    # the accumulator init/finalize path.
    mmd_tiled = mmd_rff(X, Y, W, bias, wX, wY, row_tile=8, d_tile=128)
    jax.block_until_ready(mmd_tiled)
    assert jnp.allclose(mmd_tiled, ref_w, atol=1e-3, rtol=1e-3), (mmd_tiled, ref_w)

    # D-chunked grid (parallel lane axis, nD=2) with re-fetched W chunks.
    D2 = 256
    W2 = jax.random.normal(kw, (F, D2), dtype=jnp.float32) * np.sqrt(2.0)
    bias2 = jax.random.uniform(kb, (D2,), dtype=jnp.float32,
                               minval=-np.pi, maxval=np.pi)
    mmd2 = mmd_rff(X, Y, W2, bias2, wX, wY, row_tile=8, d_tile=128)
    jax.block_until_ready(mmd2)
    ref2 = _reference(X, Y, W2, bias2, wX, wY)
    assert jnp.allclose(mmd2, ref2, atol=1e-3, rtol=1e-3), (mmd2, ref2)

    print("KERNEL_OK")
</pallas_src>

<mosaic_0001>
module attributes {stable_mosaic.version = 11 : i64} {
  func.func @_mmd_rff_kernel(%arg0: i32, %arg1: i32, %arg2: memref<16x16xf32, #tpu.memory_space<vmem>>, %arg3: memref<16x128xf32, #tpu.memory_space<vmem>>, %arg4: memref<1x128xf32, #tpu.memory_space<vmem>>, %arg5: memref<16x1xf32, #tpu.memory_space<vmem>>, %arg6: memref<1x128xf32, #tpu.memory_space<vmem>>, %arg7: memref<8x128xf32, #tpu.memory_space<vmem>>) attributes {dimension_semantics = [#tpu.dimension_semantics<parallel>, #tpu.dimension_semantics<arbitrary>], iteration_bounds = array<i64: 1, 1>, scalar_prefetch = 0 : i64, scratch_operands = 1 : i64, tpu.core_type = #tpu.core_type<tc>, window_params = [{transform_indices = @transform_0, window_bounds = array<i64: 16, 16>}, {pipeline_mode = #tpu.pipeline_mode<synchronous>, transform_indices = @transform_1, window_bounds = array<i64: 16, 128>}, {pipeline_mode = #tpu.pipeline_mode<synchronous>, transform_indices = @transform_2, window_bounds = array<i64: 1, 128>}, {transform_indices = @transform_3, window_bounds = array<i64: 16, 1>}, {transform_indices = @transform_4, window_bounds = array<i64: 1, 128>}]} {
    %c0_i32 = arith.constant 0 : i32
    %0 = arith.cmpi eq, %arg1, %c0_i32 : i32
    %1 = arith.extui %0 : i1 to i32
    %c0_i32_0 = arith.constant 0 : i32
    %2 = arith.cmpi ne, %1, %c0_i32_0 : i32
    scf.if %2 {
      %cst_20 = arith.constant 0.000000e+00 : f32
      %32 = vector.broadcast %cst_20 : f32 to vector<8x128xf32>
      %c0_21 = arith.constant 0 : index
      %c0_22 = arith.constant 0 : index
      %33 = vector.load %arg7[%c0_21, %c0_22] : memref<8x128xf32, #tpu.memory_space<vmem>>, vector<8x128xf32>
      tpu.vector_store %arg7[%c0_21, %c0_22], %32 {strides = array<i32>} : memref<8x128xf32, #tpu.memory_space<vmem>>, vector<8x128xf32>,
    } else {
    }
    %c0 = arith.constant 0 : index
    %c0_1 = arith.constant 0 : index
    %3 = vector.load %arg3[%c0, %c0_1] : memref<16x128xf32, #tpu.memory_space<vmem>>, vector<16x128xf32>
    %c0_2 = arith.constant 0 : index
    %c0_3 = arith.constant 0 : index
    %4 = vector.load %arg4[%c0_2, %c0_3] : memref<1x128xf32, #tpu.memory_space<vmem>>, vector<1x128xf32>
    %c0_4 = arith.constant 0 : index
    %c0_5 = arith.constant 0 : index
    %5 = vector.load %arg2[%c0_4, %c0_5] : memref<16x16xf32, #tpu.memory_space<vmem>>, vector<8x16xf32>
    %cst = arith.constant dense<0.000000e+00> : vector<8x128xf32>
    %6 = tpu.matmul %5, %3, %cst {dimension_numbers = #tpu.dot_dimension_numbers<[1], [0], [0], [1], [0, 0, 1, 1], [], []>} : vector<8x16xf32>, vector<16x128xf32>, vector<8x128xf32> -> vector<8x128xf32>
    %7 = vector.broadcast %4 : vector<1x128xf32> to vector<8x128xf32>
    %8 = arith.addf %6, %7 : vector<8x128xf32>
    %9 = math.cos %8 : vector<8x128xf32>
    %c0_6 = arith.constant 0 : index
    %c0_7 = arith.constant 0 : index
    %10 = vector.load %arg5[%c0_6, %c0_7] : memref<16x1xf32, #tpu.memory_space<vmem>>, vector<8x1xf32>
    %11 = vector.broadcast %10 : vector<8x1xf32> to vector<8x128xf32>
    %12 = arith.mulf %9, %11 : vector<8x128xf32>
    %13 = vector.shape_cast %12 : vector<8x128xf32> to vector<1x8x128xf32>
    %cst_8 = arith.constant dense<0.000000e+00> : vector<8x128xf32>
    %14 = vector.multi_reduction <add>, %13, %cst_8 [0] : vector<1x8x128xf32> to vector<8x128xf32>
    %c8 = arith.constant 8 : index
    %c0_9 = arith.constant 0 : index
    %15 = vector.load %arg2[%c8, %c0_9] : memref<16x16xf32, #tpu.memory_space<vmem>>, vector<8x16xf32>
    %cst_10 = arith.constant dense<0.000000e+00> : vector<8x128xf32>
    %16 = tpu.matmul %15, %3, %cst_10 {dimension_numbers = #tpu.dot_dimension_numbers<[1], [0], [0], [1], [0, 0, 1, 1], [], []>} : vector<8x16xf32>, vector<16x128xf32>, vector<8x128xf32> -> vector<8x128xf32>
    %17 = vector.broadcast %4 : vector<1x128xf32> to vector<8x128xf32>
    %18 = arith.addf %16, %17 : vector<8x128xf32>
    %19 = math.cos %18 : vector<8x128xf32>
    %c8_11 = arith.constant 8 : index
    %c0_12 = arith.constant 0 : index
    %20 = vector.load %arg5[%c8_11, %c0_12] : memref<16x1xf32, #tpu.memory_space<vmem>>, vector<8x1xf32>
    %21 = vector.broadcast %20 : vector<8x1xf32> to vector<8x128xf32>
    %22 = arith.mulf %19, %21 : vector<8x128xf32>
    %23 = vector.shape_cast %22 : vector<8x128xf32> to vector<1x8x128xf32>
    %cst_13 = arith.constant dense<0.000000e+00> : vector<8x128xf32>
    %24 = vector.multi_reduction <add>, %23, %cst_13 [0] : vector<1x8x128xf32> to vector<8x128xf32>
    %25 = arith.addf %14, %24 : vector<8x128xf32>
    %c0_14 = arith.constant 0 : index
    %c0_15 = arith.constant 0 : index
    %26 = vector.load %arg7[%c0_14, %c0_15] : memref<8x128xf32, #tpu.memory_space<vmem>>, vector<8x128xf32>
    %27 = arith.addf %26, %25 : vector<8x128xf32>
    %c0_16 = arith.constant 0 : index
    %c0_17 = arith.constant 0 : index
    %28 = vector.load %arg7[%c0_16, %c0_17] : memref<8x128xf32, #tpu.memory_space<vmem>>, vector<8x128xf32>
    tpu.vector_store %arg7[%c0_16, %c0_17], %27 {strides = array<i32>} : memref<8x128xf32, #tpu.memory_space<vmem>>, vector<8x128xf32>,
    %c0_i32_18 = arith.constant 0 : i32
    %29 = arith.cmpi eq, %arg1, %c0_i32_18 : i32
    %30 = arith.extui %29 : i1 to i32
    %c0_i32_19 = arith.constant 0 : i32
    %31 = arith.cmpi ne, %30, %c0_i32_19 : i32
    scf.if %31 {
      %c0_20 = arith.constant 0 : index
      %c0_21 = arith.constant 0 : index
      %32 = vector.load %arg7[%c0_20, %c0_21] : memref<8x128xf32, #tpu.memory_space<vmem>>, vector<8x128xf32>
      %cst_22 = arith.constant dense<0.000000e+00> : vector<128xf32>
      %33 = vector.multi_reduction <add>, %32, %cst_22 [0] : vector<8x128xf32> to vector<128xf32>
      %34 = vector.shape_cast %33 : vector<128xf32> to vector<1x128xf32>
      %c0_23 = arith.constant 0 : index
      %c0_24 = arith.constant 0 : index
      %35 = vector.load %arg6[%c0_23, %c0_24] : memref<1x128xf32, #tpu.memory_space<vmem>>, vector<1x128xf32>
      tpu.vector_store %arg6[%c0_23, %c0_24], %34 {strides = array<i32>} : memref<1x128xf32, #tpu.memory_space<vmem>>, vector<1x128xf32>,
    } else {
    }
    return
  }
  func.func @transform_0(%arg0: i32, %arg1: i32) -> (i32, i32) {
    %c0_i32 = arith.constant 0 : i32
    %c0_i32_0 = arith.constant 0 : i32
    return %arg1, %c0_i32 : i32, i32
  }
  func.func @transform_1(%arg0: i32, %arg1: i32) -> (i32, i32) {
    %c0_i32 = arith.constant 0 : i32
    %c0_i32_0 = arith.constant 0 : i32
    return %c0_i32, %arg0 : i32, i32
  }
  func.func @transform_2(%arg0: i32, %arg1: i32) -> (i32, i32) {
    %c0_i32 = arith.constant 0 : i32
    %c0_i32_0 = arith.constant 0 : i32
    return %c0_i32, %arg0 : i32, i32
  }
  func.func @transform_3(%arg0: i32, %arg1: i32) -> (i32, i32) {
    %c0_i32 = arith.constant 0 : i32
    %c0_i32_0 = arith.constant 0 : i32
    return %arg1, %c0_i32 : i32, i32
  }
  func.func @transform_4(%arg0: i32, %arg1: i32) -> (i32, i32) {
    %c0_i32 = arith.constant 0 : i32
    %c0_i32_0 = arith.constant 0 : i32
    return %c0_i32, %arg0 : i32, i32
  }
}

</mosaic_0001>

<bundles_post_ra>
// kernel: tpu_custom_call.1
= control target key start
LH: loop header
LB: loop body
LE: loop exit
PB: predicated region body
PF: predicated region fallthrough
CT: control target
= control target key end

     0   :  { %9 = vsyncpa [#allocation4], 0  ;;  %s728_s0 = inlined_call_operand.vmem [shape: f32[16,16], index: 0, kind: input, shape index: {}]   ;;  %s729_s1 = inlined_call_operand.hbm [shape: f32[16,128], index: 1, kind: input, shape index: {}]   ;;  %s730_s2 = inlined_call_operand.vmem [shape: f32[1,128], index: 2, kind: input, shape index: {}]   ;;  %s731_s3 = inlined_call_operand.vmem [shape: f32[16,1], index: 3, kind: input, shape index: {}]   ;;  %s732_s4 = inlined_call_operand.hbm [shape: f32[1,128], index: 4, kind: output, shape index: {}]  }
   0x1   :  { %10 = vsyncpa [#allocation5], 0  ;;  %s563_s15 = smov [#allocation3]   ;;  %s515_s19 = scalar_lea.hbm %s729_s1, 256 }
   0x2   :  { %s18_s16 = sshll.u32 %s563_s15, 4  ;;  %p516_p0 = scmp.ne.s32.totalorder %s729_s1, %s515_s19  ;;  %s19_s16 = int_to_ptr.vmem [resolvable:$true] %s18_s16 }
   0x3   :  { %p519_p1 = scmp.lt.u32.totalorder %s515_s19, %s729_s1 }
   0x5   :  { %p521_p2 = pnand %p519_p1, %p516_p0 }
   0x7   :  { %524 = shalt.err (!%p521_p2)
}
   0x8   :  { %s525_s24 = scalar_lea.vmem %s19_s16, 256  ;;  %p530_p4 = scmp.lt.s32.totalorder %s19_s16, %s19_s16 }
   0x9   :  { %p526_p3 = scmp.ne.s32.totalorder %s19_s16, %s525_s24  ;;  %p531_p5 = scmp.lt.s32.totalorder %s525_s24, %s525_s24 }
   0xb   :  { %p532_p6 = por %p531_p5, %p530_p4 }
   0xd   :  { %p533_p7 = pnand %p532_p6, %p526_p3 }
   0xf   :  { %536 = shalt.err (!%p533_p7)
}
  0x10   :  { %s564_s25 = smov 128   ;;  %s565_s26 = smov 8  }
  0x11   :  { %24 = dma.hbm_to_vmem [thread:$0]  %s729_s1, 256, %s19_s16, [#allocation4], %s564_s25, %s564_s25, %s565_s26  }
  0x12   :  { %559 = dma.done.wait [#allocation4], 256  }
  0x13   :  { %560 = vsyncadd [#allocation4], 4294967040  ;;  %v566_v0 = vmov 0.0|0.0   ;;  %vm567_vm0 = vmmov 0   ;;  %v568_v1 = vmov 0.0   ;;  %v569_v2 = vmov 0  }
  0x14   :  { %478 = vmatprep.subr.bf16.mxu0 %v566_v0  ;;  %481 = vmatprep.subr.bf16.mxu1 %v566_v0  ;;  %v37_v3 = vld [vmem:[#allocation3] sm:$0xff]  ;;  %v38_v4 = vld [vmem:[#allocation3 + $0x8] sm:$0xff]  ;;  %vm47_vm1 = vcmask 130048   ;;  %v570_v39 = vmov 2102212464  }
  0x15   :  { %468 = vmatprep.mubr.msk.f32.mxu0 %vm567_vm0, %v568_v1  ;;  %475 = vmatprep.mubr.msk.f32.mxu1 %vm567_vm0, %v568_v1  ;;  %v479_v5 = vpack.c.bf16 %v38_v4, %v37_v3  ;;  %v224_v6 = vld [vmem:[%s731_s3] sm:$0xff]  ;;  %v232_v8 = vld [vmem:[%s728_s0 + $0x8] sm:$0xff]  ;;  %v571_v41 = vmov 920167782   ;;  %v572_v45 = vmov 1326507024  }
  0x16   :  { %506 = vset.pattern.permute.xlu0 %v569_v2  ;;  %v40_v7 = vld [vmem:[%s728_s0] sm:$0xff]  ;;  %v409_v9 = vld [vmem:[%s731_s3 + $0x8] sm:$0xff]  ;;  %v573_v51 = vmov 683565275   ;;  %v574_v53 = vmov 2475754826  }
  0x17   :  { %227 = vperm.xlu0 %506, %v224_v6   ;;  %480 = vmatpush3.bf16.msra.mxu0 %v479_v5  ;;  %v447_v10 = vld [vmem:[%s730_s2] ss:$0 sm:$0xff]  ;;  %v575_v58 = vmov 2131351028   ;;  %s576_s0 = smov [#allocation6]  }
  0x18   :  { %483 = vmatpush3.bf16.msra.mxu1 %v479_v5  ;;  %s438_s2 = sshll.u32 %s576_s0, 4  ;;  %s439_s2 = int_to_ptr.vmem [resolvable:$true] %s438_s2 }
  0x19   :  { %s537_s3 = scalar_lea.vmem %s439_s2, 16  ;;  %s541_s12 = scalar_lea.vmem %s439_s2, 32 }
  0x1a   :  { %469 = vmatmul.mubr.msk.f32.vlgmr.msra.gmra.mrb[0].mxu0 %vm47_vm1, %v40_v7  ;;  %p538_p8 = scmp.ne.s32.totalorder %s439_s2, %s537_s3  ;;  %p542_p9 = scmp.lt.s32.totalorder %s439_s2, %s439_s2 }
  0x1b   :  { %476 = vmatmul.mubr.msk.f32.vlgmr.msra.gmra.mrb[0].mxu1 %vm47_vm1, %v232_v8  ;;  %412 = vperm.xlu0 %506, %v409_v9   ;;  %p543_p10 = scmp.lt.s32.totalorder %s541_s12, %s537_s3 }
  0x1d   :  { %p544_p11 = por %p543_p10, %p542_p9 }
  0x1f   :  { %p545_p12 = pnand %p544_p11, %p538_p8 }
  0xed   :  { %v117_v11 = vpop.f32.mrb[0].mxu0 }
  0xee   :  { %v302_v12 = vpop.f32.mrb[0].mxu1  ;;  %v629_v13 = vadd.f32 %v447_v10, %v117_v11  ;;  %v470_v15 = vpop.f32.mrb[1].mxu0 }
  0xef   :  { %v631_v14 = vadd.f32 %v447_v10, %v302_v12  ;;  %v477_v16 = vpop.f32.mrb[1].mxu1 }
  0xf0   :  { %v124_v17 = vand.u32 2139095040, %v629_v13  ;;  %v121_v19 = vand.u32 2147483647, %v629_v13  ;;  %vm123_vm0 = vcmp.lt.s32.totalorder %v629_v13, 0 }
  0xf1   :  { %v309_v18 = vand.u32 2139095040, %v631_v14  ;;  %v306_v25 = vand.u32 2147483647, %v631_v14 }
  0xf2   :  { %v125_v20 = vshrl.u32 %v124_v17, 23  ;;  %v128_v24 = vand.u32 8388607, %v121_v19  ;;  %vm693_vm1 = vcmp.le.f32.partialorder %v121_v19, 0.7853982 }
  0xf3   :  { %v310_v21 = vshrl.u32 %v309_v18, 23  ;;  %v641_v29 = vand.u32 8388607, %v306_v25 }
  0xf4   :  { %v449_v22 = vadd.s32 4294967169, %v125_v20  ;;  %v129_v28 = vor.u32 8388608, %v128_v24 }
  0xf5   :  { %v454_v23 = vadd.s32 4294967169, %v310_v21  ;;  %v314_v38 = vor.u32 8388608, %v641_v29 }
  0xf6   :  { %v131_v26 = vadd.s32 1, %v449_v22  ;;  %v645_v37 = vshll.u32 %v129_v28, 8 }
  0xf7   :  { %v316_v27 = vadd.s32 1, %v454_v23 }
  0xf8   :  { %vm132_vm2 = vcmp.gt.s32.totalorder %v131_v26, 0 }
  0xf9   :  { %vm317_vm3 = vcmp.gt.s32.totalorder %v316_v27, 0  ;;  %v133_v30 = vsel %vm132_vm2, %v131_v26, 0  ;;  %vm308_vm2 = vcmp.lt.s32.totalorder %v631_v14, 0 }
  0xfa   :  { %v318_v31 = vsel %vm317_vm3, %v316_v27, 0  ;;  %v134_v32 = vshrl.u32 %v133_v30, 5  ;;  %v135_v33 = vand.u32 31, %v133_v30  ;;  %vm705_vm3 = vcmp.le.f32.partialorder %v306_v25, 0.7853982 }
  0xfb   :  { %v320_v34 = vand.u32 31, %v318_v31  ;;  %v643_v36 = vshrl.u32 %v318_v31, 5 }
  0xfc   :  { %v136_v35 = vsub.s32 32, %v135_v33  ;;  %v147_v40 = vshll.u32 %v570_v39, %v135_v33  ;;  %v150_v42 = vshll.u32 %v571_v41, %v135_v33  ;;  %vm156_vm4 = vcmp.lt.s32.totalorder %v134_v32, 4 }
  0xfd   :  { %v321_v43 = vsub.s32 32, %v320_v34  ;;  %v332_v47 = vshll.u32 %v570_v39, %v320_v34  ;;  %v335_v48 = vshll.u32 %v571_v41, %v320_v34  ;;  %v138_v52 = vshll.u32 %v573_v51, %v135_v33 }
  0xfe   :  { %v148_v44 = vshrl.u32 %v571_v41, %v136_v35  ;;  %v151_v46 = vshrl.u32 %v572_v45, %v136_v35  ;;  %v139_v54 = vshrl.u32 %v574_v53, %v136_v35  ;;  %v141_v57 = vshll.u32 %v574_v53, %v135_v33 }
  0xff   :  { %v333_v49 = vshrl.u32 %v571_v41, %v321_v43  ;;  %v336_v50 = vshrl.u32 %v572_v45, %v321_v43  ;;  %v142_v59 = vshrl.u32 %v575_v58, %v136_v35  ;;  %vm341_vm5 = vcmp.lt.s32.totalorder %v643_v36, 4 }
 0x100   :  { %v149_v55 = vor.u32 %v148_v44, %v147_v40  ;;  %v152_v56 = vor.u32 %v151_v46, %v150_v42  ;;  %v140_v60 = vor.u32 %v139_v54, %v138_v52  ;;  %v144_v61 = vshll.u32 %v575_v58, %v135_v33 }
 0x101   :  { %v145_v62 = vshrl.u32 %v570_v39, %v136_v35  ;;  %v137_v1 = vshrl.u32 %v573_v51, %v136_v35  ;;  %v143_v2 = vor.u32 %v142_v59, %v141_v57  ;;  %v334_v3 = vor.u32 %v333_v49, %v332_v47 }
 0x102   :  { %v162_v63 = vsel %vm156_vm4, %v149_v55, 920167782  ;;  %v166_v0 = vsel %vm156_vm4, %v152_v56, 1326507024  ;;  %v337_v4 = vor.u32 %v336_v50, %v335_v48  ;;  %vm153_vm6 = vcmp.lt.s32.totalorder %v134_v32, 1 }
 0x103   :  { %v146_v5 = vor.u32 %v145_v62, %v144_v61  ;;  %vm154_vm7 = vcmp.lt.s32.totalorder %v134_v32, 2  ;;  %vm155_vm8 = vcmp.lt.s32.totalorder %v134_v32, 3  ;;  %v157_v6 = vsel %vm153_vm6, %v137_v1, %v140_v60 }
 0x104   :  { %v161_v7 = vsel %vm153_vm6, %v140_v60, %v143_v2  ;;  %v167_v11 = vsel %vm155_vm8, %v149_v55, %v166_v0  ;;  %v323_v17 = vshll.u32 %v573_v51, %v320_v34  ;;  %v324_v22 = vshrl.u32 %v574_v53, %v321_v43 }
 0x105   :  { %v158_v8 = vsel %vm156_vm4, %v146_v5, 2102212464  ;;  %v163_v9 = vsel %vm155_vm8, %v146_v5, %v162_v63  ;;  %v165_v10 = vsel %vm153_vm6, %v143_v2, %v146_v5  ;;  %v351_v23 = vsel %vm341_vm5, %v337_v4, 1326507024 }
 0x106   :  { %v159_v12 = vsel %vm155_vm8, %v143_v2, %v158_v8  ;;  %v164_v15 = vsel %vm154_vm7, %v161_v7, %v163_v9  ;;  %v168_v16 = vsel %vm154_vm7, %v165_v10, %v167_v11  ;;  %v326_v27 = vshll.u32 %v574_v53, %v320_v34 }
 0x107   :  { %v160_v18 = vsel %vm154_vm7, %v157_v6, %v159_v12  ;;  %v653_v20 = vmul.u32.u64.low %v645_v37, %v168_v16  ;;  %v654_v21 = vmul.u32.u64.high %v645_v37, %v168_v16, %v653_v20  ;;  %v325_v28 = vor.u32 %v324_v22, %v323_v17 }
 0x108   :  { %v659_v24 = vmul.u32.u64.low %v645_v37, %v164_v15  ;;  %v660_v26 = vmul.u32.u64.high %v645_v37, %v164_v15, %v659_v24  ;;  %v327_v29 = vshrl.u32 %v575_v58, %v321_v43  ;;  %v329_v30 = vshll.u32 %v575_v58, %v320_v34 }
 0x109   :  { %v330_v31 = vshrl.u32 %v570_v39, %v321_v43  ;;  %v347_v32 = vsel %vm341_vm5, %v334_v3, 920167782  ;;  %v176_v33 = vmul.u32 %v645_v37, %v160_v18  ;;  %v322_v35 = vshrl.u32 %v573_v51, %v321_v43 }
 0x10a   :  { %v354_v40 = vshll.u32 %v314_v38, 8  ;;  %vm178_vm9 = vc.u32 %v654_v21, %v659_v24  ;;  %v328_v41 = vor.u32 %v327_v29, %v326_v27  ;;  %vm340_vm10 = vcmp.lt.s32.totalorder %v643_v36, 3 }
 0x10b   :  { %v331_v42 = vor.u32 %v330_v31, %v329_v30  ;;  %v179_v44 = vadd.s32 1, %v660_v26  ;;  %vm338_vm11 = vcmp.lt.s32.totalorder %v643_v36, 1  ;;  %vm339_vm12 = vcmp.lt.s32.totalorder %v643_v36, 2 }
 0x10c   :  { %v352_v34 = vsel %vm340_vm10, %v334_v3, %v351_v23  ;;  %v346_v45 = vsel %vm338_vm11, %v325_v28, %v328_v41  ;;  %v342_v46 = vsel %vm338_vm11, %v322_v35, %v325_v28  ;;  %v177_v9 = vadd.s32 %v659_v24, %v654_v21 }
 0x10d   :  { %v343_v39 = vsel %vm341_vm5, %v331_v42, 2102212464  ;;  %v348_v37 = vsel %vm340_vm10, %v331_v42, %v347_v32  ;;  %v350_v43 = vsel %vm338_vm11, %v328_v41, %v331_v42  ;;  %v180_v38 = vsel %vm178_vm9, %v179_v44, %v660_v26 }
 0x10e   :  { %v349_v47 = vsel %vm339_vm12, %v346_v45, %v348_v37  ;;  %v353_v48 = vsel %vm339_vm12, %v350_v43, %v352_v34  ;;  %v181_v49 = vadd.s32 %v180_v38, %v176_v33  ;;  %v344_v50 = vsel %vm340_vm10, %v328_v41, %v343_v39 }
 0x10f   :  { %v677_v51 = vmul.u32.u64.low %v354_v40, %v353_v48  ;;  %v678_v52 = vmul.u32.u64.high %v354_v40, %v353_v48, %v677_v51  ;;  %v680_v53 = vmul.u32.u64.low %v354_v40, %v349_v47  ;;  %v681_v54 = vmul.u32.u64.high %v354_v40, %v349_v47, %v680_v53 }
 0x110   :  { %v182_v55 = vadd.s32 536870912, %v181_v49  ;;  %v345_v56 = vsel %vm339_vm12, %v342_v46, %v344_v50  ;;  %vm213_vm7 = vweird.f32 %v629_v13  ;;  %vm398_vm11 = vweird.f32 %v631_v14 }
 0x111   :  { %vm363_vm13 = vc.u32 %v678_v52, %v680_v53  ;;  %v364_v58 = vadd.s32 1, %v681_v54  ;;  %v361_v60 = vmul.u32 %v354_v40, %v345_v56  ;;  %v362_v30 = vadd.s32 %v680_v53, %v678_v52 }
 0x112   :  { %v183_v57 = vshrl.u32 %v182_v55, 30 }
 0x113   :  { %v365_v61 = vsel %vm363_vm13, %v364_v58, %v681_v54 }
 0x114   :  { %v184_v59 = vshll.u32 %v183_v57, 30  ;;  %v366_v63 = vadd.s32 %v365_v61, %v361_v60  ;;  %v207_v37 = vsub.s32 4, %v183_v57 }
 0x116   :  { %v185_v62 = vsub.s32 %v181_v49, %v184_v59  ;;  %v367_v1 = vadd.s32 536870912, %v366_v63  ;;  %v208_v47 = vsel %vm123_vm0, %v207_v37, %v183_v57 }
 0x117   :  { %v210_v19 = vsel %vm693_vm1, 0, %v208_v47 }
 0x118   :  { %v187_v0 = vsub.s32 0, %v185_v62  ;;  %v368_v3 = vshrl.u32 %v367_v1, 30  ;;  %v214_v54 = vand.u32 3, %v210_v19 }
 0x11a   :  { %v450_v2 = vmin.u32 %v187_v0, %v185_v62  ;;  %v369_v5 = vshll.u32 %v368_v3, 30  ;;  %v392_v51 = vsub.s32 4, %v368_v3  ;;  %vm216_vm4 = vcmp.eq.s32.totalorder %v214_v54, 0  ;;  %v228_v0 = vpop.permute.xlu0 %227 }
 0x11b   :  { %vm219_vm5 = vcmp.eq.s32.totalorder %v214_v54, 2  ;;  %vm215_vm6 = vcmp.lt.s32.totalorder %v214_v54, 2 }
 0x11c   :  { %v189_v4 = vclz %v450_v2  ;;  %v370_v36 = vsub.s32 %v366_v63, %v369_v5  ;;  %v393_v57 = vsel %vm308_vm2, %v392_v51, %v368_v3 }
 0x11d   :  { %v395_v25 = vsel %vm705_vm3, 0, %v393_v57 }
 0x11e   :  { %v451_v6 = vadd.s32 4294967294, %v189_v4  ;;  %v372_v8 = vsub.s32 0, %v370_v36  ;;  %v399_v61 = vand.u32 3, %v395_v25 }
 0x120   :  { %vm452_vm14 = vcmp.lt.s32.totalorder %v451_v6, 0  ;;  %v455_v12 = vmin.u32 %v372_v8, %v370_v36  ;;  %vm404_vm8 = vcmp.eq.s32.totalorder %v399_v61, 2  ;;  %vm401_vm9 = vcmp.eq.s32.totalorder %v399_v61, 0  ;;  %v413_v8 = vpop.permute.xlu0 %412 }
 0x121   :  { %v192_v7 = vsel %vm452_vm14, 0, %v451_v6  ;;  %vm400_vm10 = vcmp.lt.s32.totalorder %v399_v61, 2 }
 0x122   :  { %v193_v10 = vsub.s32 32, %v192_v7  ;;  %v197_v11 = vsub.s32 4294967266, %v192_v7  ;;  %v194_v15 = vshll.u32 %v185_v62, %v192_v7  ;;  %v374_v18 = vclz %v455_v12 }
 0x124   :  { %v195_v16 = vshrl.u32 %v177_v9, %v193_v10  ;;  %v198_v17 = vadd.s32 127, %v197_v11  ;;  %v456_v23 = vadd.s32 4294967294, %v374_v18 }
 0x126   :  { %v196_v20 = vor.u32 %v195_v16, %v194_v15  ;;  %v199_v22 = vshll.u32 %v198_v17, 23  ;;  %vm457_vm15 = vcmp.lt.s32.totalorder %v456_v23, 0 }
 0x127   :  { %v377_v29 = vsel %vm457_vm15, 0, %v456_v23 }
 0x128   :  { %v200_v26 = vor.u32 4788187, %v199_v22  ;;  %v203_v28 = vcvt.s32.f32 %v196_v20  ;;  %v378_v31 = vsub.s32 32, %v377_v29  ;;  %v382_v32 = vsub.s32 4294967266, %v377_v29 }
 0x129   :  { %v379_v24 = vshll.u32 %v370_v36, %v377_v29 }
 0x12a   :  { %v201_v27 = vand.u32 2147483647, %v200_v26  ;;  %v380_v33 = vshrl.u32 %v362_v30, %v378_v31  ;;  %v383_v35 = vadd.s32 127, %v382_v32 }
 0x12c   :  { %v204_v21 = vmul.f32 %v203_v28, %v201_v27  ;;  %v381_v41 = vor.u32 %v380_v33, %v379_v24  ;;  %v384_v42 = vshll.u32 %v383_v35, 23 }
 0x12e   :  { %v205_v40 = vxor.u32 2147483648, %v204_v21  ;;  %v385_v45 = vor.u32 4788187, %v384_v42  ;;  %v388_v38 = vcvt.s32.f32 %v381_v41 }
 0x130   :  { %v206_v34 = vsel %vm123_vm0, %v205_v40, %v204_v21  ;;  %v386_v43 = vand.u32 2147483647, %v385_v45 }
 0x131   :  { %v209_v39 = vsel %vm693_vm1, %v629_v13, %v206_v34 }
 0x132   :  { %507 = vcosq.f32 %v209_v39  ;;  %v389_v46 = vmul.f32 %v388_v38, %v386_v43 }
 0x133   :  { %509 = vsinq.f32 %v209_v39 }
 0x134   :  { %v390_v48 = vxor.u32 2147483648, %v389_v46 }
 0x136   :  { %v391_v50 = vsel %vm308_vm2, %v390_v48, %v389_v46 }
 0x137   :  { %v394_v52 = vsel %vm705_vm3, %v631_v14, %v391_v50 }
 0x138   :  { %511 = vcosq.f32 %v394_v52 }
 0x139   :  { %513 = vsinq.f32 %v394_v52 }
 0x13c   :  { %v508_v53 = vpop.eup %507 }
 0x13d   :  { %v510_v55 = vpop.eup %509  ;;  %v220_v56 = vxor.u32 2147483648, %v508_v53 }
 0x13e   :  { %v217_v58 = vxor.u32 2147483648, %v510_v55 }
 0x13f   :  { %v221_v60 = vsel %vm219_vm5, %v220_v56, %v510_v55 }
 0x140   :  { %v218_v59 = vsel %vm216_vm4, %v508_v53, %v217_v58 }
 0x141   :  { %v222_v62 = vsel %vm215_vm6, %v218_v59, %v221_v60 }
 0x142   :  { %v512_v63 = vpop.eup %511  ;;  %v223_v4 = vsel %vm213_vm7, nan, %v222_v62 }
 0x143   :  { %v514_v1 = vpop.eup %513  ;;  %v405_v2 = vxor.u32 2147483648, %v512_v63  ;;  %v230_v36 = vmul.f32 %v228_v0, %v223_v4 }
 0x144   :  { %v402_v5 = vxor.u32 2147483648, %v514_v1 }
 0x145   :  { %v406_v3 = vsel %vm404_vm8, %v405_v2, %v514_v1 }
 0x146   :  { %v403_v6 = vsel %vm401_vm9, %v512_v63, %v402_v5 }
 0x147   :  { %v407_v7 = vsel %vm400_vm10, %v403_v6, %v406_v3 }
 0x148   :  { %v408_v9 = vsel %vm398_vm11, nan, %v407_v7 }
 0x149   :  { %v415_v10 = vmul.f32 %v413_v8, %v408_v9 }
 0x14b   :  { %v417_v11 = vadd.f32 %v415_v10, %v230_v36 }
 0x14d   :  { %v425_v12 = vrot.slane %v417_v11, 4 }
 0x14f   :  { %v426_v15 = vadd.f32 %v425_v12, %v417_v11 }
 0x151   :  { %v427_v16 = vrot.slane %v426_v15, 2 }
 0x153   :  { %v428_v13 = vadd.f32 %v427_v16, %v426_v15 }
 0x155   :  { %v429_v17 = vrot.slane %v428_v13, 1 }
 0x157   :  { %v430_v18 = vadd.f32 %v429_v17, %v428_v13 }
 0x159   :  { %431 = vst [vmem:[#allocation6] sm:$0x1] %v430_v18 }
 0x15a   :  { %548 = shalt.err (!%p545_p12)
}
 0x15b   :  { %s549_s15 = scalar_lea.hbm %s732_s4, 16 }
 0x15c   :  { %p550_p13 = scmp.ne.s32.totalorder %s732_s4, %s549_s15  ;;  %p553_p0 = scmp.lt.u32.totalorder %s549_s15, %s732_s4 }
 0x15e   :  { %p555_p1 = pnand %p553_p0, %p550_p13 }
 0x160   :  { %558 = shalt.err (!%p555_p1)
}
 0x161   :  { %441 = dma.vmem_to_hbm [thread:$0]  %s439_s2, 16, %s732_s4, [#allocation5]  }
 0x162   :  { %561 = dma.done.wait [#allocation5], 16  }
 0x163   :  { %562 = vsyncadd [#allocation5], 4294967280 }
 0x164   :  { %445 = vsyncpa [#allocation4], 1 }
 0x165   :  { %446 = vsyncpa [#allocation5], 1 }

</bundles_post_ra>
